<compile_context>
chip_gen: v6e
topology: v6e:2x2x1
jax: 0.10.0
libtpu: 0.0.40
codegen_flags: <defaults>
</compile_context>

<pallas_src>
import jax
import jax.numpy as jnp
from jax import lax
from jax.experimental import pallas as pl
from jax.experimental.pallas import tpu as pltpu

# ----------------------------- configuration --------------------------------
D_MODEL = 32
D_STATE = 16
D_CONV = 4
EXPAND = 2
HEADDIM = 64            # mamba_ssm Mamba2 default
NGROUPS = 1             # mamba_ssm Mamba2 default
NUM_CYCLES = 1
NUM_BLOCKS = NUM_CYCLES * 6
RMS_EPS = 1e-6
GATED_EPS = 1e-5        # Mamba2's internal RMSNormGated eps

D_INNER = EXPAND * D_MODEL                      # 64
NHEADS = D_INNER // HEADDIM                     # 1
CONV_DIM = D_INNER + 2 * NGROUPS * D_STATE      # 96
D_IN_PROJ = 2 * D_INNER + 2 * NGROUPS * D_STATE + NHEADS  # 161
D_FF = 4 * D_MODEL                              # 128

FUSED_IN = 256                                  # fused in_proj width padded to one 256-wide pass
K32_W = FUSED_IN + D_FF                         # 384

BATCH = 2
SEQ = 8

assert NHEADS == 1 and NGROUPS == 1
# TODO(synk): NHEADS > 1 / NGROUPS > 1 would need a (D_MODEL, NHEADS) dt projection,
#             per-group B/C handling and a head-broadcast of `scale`.


# ----------------------------- small math helpers (kernel-only) --------------
def _erf_approx(x):
    # Abramowitz & Stegun 7.1.26, |err| < 1.5e-7; divide replaced by EUP approx reciprocal.
    a1, a2, a3, a4, a5 = 0.254829592, -0.284496736, 1.421413741, -1.453152027, 1.061405429
    p = 0.3275911
    s = jnp.where(x >= 0.0, 1.0, -1.0)
    ax = jnp.abs(x)
    t = pl.reciprocal(1.0 + p * ax, approx=True)
    poly = t * (a1 + t * (a2 + t * (a3 + t * (a4 + t * a5))))
    return s * (1.0 - poly * jnp.exp(-ax * ax))


def _gelu_exact(x):
    # erf-based GELU (matches torch nn.GELU() default).
    return 0.5 * x * (1.0 + _erf_approx(x * 0.7071067811865476))


def _softplus(x):
    return jnp.maximum(x, 0.0) + jnp.log(1.0 + jnp.exp(-jnp.abs(x)))


def _silu(x):
    # x * sigmoid(x) with the divide moved to the EUP (approx reciprocal).
    return x * pl.reciprocal(1.0 + jnp.exp(-x), approx=True)


# ----------------------------- the Pallas kernel -----------------------------
def submodel2_kernel(emb_ref, mask_ref, w_k32_ref, w_n32_ref, vecs_ref, out_ref):
    # --- masked mean pooling (runs once) ---
    emb = emb_ref[...]                                         # (B, S, D)
    mask = mask_ref[...]                                       # (B, S)
    masked = mask[:, :, None] * emb
    mask_len = jnp.sum(mask, axis=1, keepdims=True)            # (B, 1)
    x0 = jnp.sum(masked, axis=1) / (mask_len + 1e-8)           # (B, D_MODEL); one-time exact divide

    def block(i, x):
        # per-block packed views (dynamic leading index; loads stay inside the loop body)
        w_a = w_k32_ref[i]                                     # (32, 384): [fused in_proj | mlp_w1]
        w_b = w_n32_ref[i]                                     # (192, 32): [out_proj ; mlp_w2]
        vec = vecs_ref[i]                                      # (4, 128)

        n1w = vec[0:1, 0:32]                                   # norm1 weight
        n2w = vec[0:1, 32:64]                                  # norm2 weight
        gw = vec[0:1, 64:128]                                  # gated-RMSNorm weight
        b1 = vec[1:2, :]                                       # mlp bias 1 (128)
        b_lo = vec[2:3, :]                                     # [conv_b(x) (64) | 0 (z)]
        b_hi = vec[3:4, :]                                     # [conv_b(B)|conv_b(C)|dt_bias|D|0|mlp_b2|0]

        # ============ x = x + Mamba2(RMSNorm1(x))  (L == 1 specialization) ============
        inv1 = lax.rsqrt(jnp.sum(x * x, axis=-1, keepdims=True) + RMS_EPS)
        h = n1w * x * inv1                                     # (B, D_MODEL)

        # single fused 256-wide projection: [x(64) | z(64) | B(16) | C(16) | dt(1) | pad]
        zz = jnp.dot(h, w_a[:, 0:FUSED_IN], preferred_element_type=jnp.float32)  # (B, 256)
        lo = _silu(zz[:, 0:128] + b_lo)                        # [silu(conv_x) | silu(z)]
        hi = zz[:, 128:256] + b_hi                             # [B_pre | C_pre | dt_pre | D | junk]

        xs = lo[:, 0:64]                                       # silu(x_conv)   (B, D_INNER)
        sz = lo[:, 64:128]                                     # silu(z)        (B, D_INNER)
        bc = _silu(hi[:, 0:32])
        Bm = bc[:, 0:16]                                       # (B, D_STATE)
        Cm = bc[:, 16:32]                                      # (B, D_STATE)
        dt = _softplus(hi[:, 32:33])                           # softplus(dt + dt_bias)  (B, 1)
        Dv = hi[:, 33:34]                                      # D (zero weight column + bias) (B, 1)

        cb = jnp.sum(Bm * Cm, axis=-1, keepdims=True)          # (B, 1)
        y = (dt * cb + Dv) * xs                                # broadcast over the single head
        y = y * sz                                             # gate
        y = gw * y * lax.rsqrt(jnp.mean(y * y, axis=-1, keepdims=True) + GATED_EPS)

        x = x + jnp.dot(y, w_b[0:64, :], preferred_element_type=jnp.float32)      # out_proj

        # ===================== x = x + MLP(RMSNorm2(x)) ==============================
        inv2 = lax.rsqrt(jnp.sum(x * x, axis=-1, keepdims=True) + RMS_EPS)
        h2 = n2w * x * inv2
        ff = _gelu_exact(jnp.dot(h2, w_a[:, FUSED_IN:K32_W],
                                 preferred_element_type=jnp.float32) + b1)         # (B, D_FF)
        b2 = b_hi[:, 64:96]                                     # mlp bias 2 (32)
        x = x + jnp.dot(ff, w_b[64:192, :], preferred_element_type=jnp.float32) + b2
        return x

    out_ref[...] = lax.fori_loop(0, NUM_BLOCKS, block, x0)      # single (2,32) store


# ----------------------------- wrapper ---------------------------------------
def _prep_inputs(embeddings, attention_mask, params):
    """Slice / fold / transpose / pack parameters into 3 VMEM slabs (done once, outside)."""
    nb = NUM_BLOCKS
    t = lambda a: jnp.transpose(a, (0, 2, 1))                  # (nb, N, K) -> (nb, K, N)
    zeros = lambda n: jnp.zeros((nb, n), jnp.float32)

    ip = params["in_proj_w"]                                    # (nb, 161, 32)
    tap = params["conv_w"][:, :, -1]                            # only the last causal tap fires at L==1
    w_z = ip[:, :D_INNER, :]
    w_x = ip[:, D_INNER:2 * D_INNER, :] * tap[:, :D_INNER, None]
    w_B = ip[:, 2 * D_INNER:2 * D_INNER + D_STATE, :] * tap[:, D_INNER:D_INNER + D_STATE, None]
    w_C = ip[:, 2 * D_INNER + D_STATE:D_INNER + CONV_DIM, :] * tap[:, D_INNER + D_STATE:, None]
    w_dt = ip[:, D_INNER + CONV_DIM:, :]                        # (nb, 1, 32)

    # fused in_proj, K=32 -> 256 lanes: [x(64) | z(64) | B(16) | C(16) | dt(1) | zero pad(95)]
    w_in = jnp.concatenate(
        [t(w_x), t(w_z), t(w_B), t(w_C), t(w_dt),
         jnp.zeros((nb, D_MODEL, FUSED_IN - D_IN_PROJ), jnp.float32)], axis=2)      # (nb, 32, 256)
    w_k32 = jnp.concatenate([w_in, t(params["mlp_w1"])], axis=2)                     # (nb, 32, 384)

    # K-stacked N=32 weights: [out_proj (64 rows) ; mlp_w2 (128 rows)]
    w_n32 = jnp.concatenate([t(params["out_proj_w"]), t(params["mlp_w2"])], axis=1)  # (nb, 192, 32)

    cb = params["conv_b"]                                       # (nb, 96)
    row0 = jnp.concatenate([params["norm1_w"], params["norm2_w"], params["gated_w"]], axis=1)
    row1 = params["mlp_b1"]
    row2 = jnp.concatenate([cb[:, :D_INNER], zeros(64)], axis=1)                     # bias for [x | z]
    row3 = jnp.concatenate([cb[:, D_INNER:D_INNER + D_STATE],                        # bias for B
                            cb[:, D_INNER + D_STATE:],                               # bias for C
                            params["dt_bias"], params["D"], zeros(30),               # dt_bias, D
                            params["mlp_b2"], zeros(32)], axis=1)                    # mlp bias 2
    vecs = jnp.stack([row0, row1, row2, row3], axis=1)                               # (nb, 4, 128)

    # note: A_log is intentionally not passed (provably unused at L == 1).
    return embeddings, attention_mask, w_k32, w_n32, vecs


def submodel2_pallas(embeddings, attention_mask, params):
    inputs = _prep_inputs(embeddings, attention_mask, params)
    vmem = lambda: pl.BlockSpec(memory_space=pltpu.MemorySpace.VMEM)
    return pl.pallas_call(
        submodel2_kernel,
        out_shape=jax.ShapeDtypeStruct((BATCH, D_MODEL), jnp.float32),
        in_specs=[vmem() for _ in range(len(inputs))],          # 5 whole-array VMEM inputs
        out_specs=pl.BlockSpec(memory_space=pltpu.MemorySpace.VMEM),
    )(*inputs)


# ----------------------------- pure-JAX reference ----------------------------
def _rmsnorm_ref(x, w):
    # module's RMSNorm: weight * x / sqrt(||x||_2^2 + eps)
    return w * x / jnp.sqrt(jnp.sum(x * x, axis=-1, keepdims=True) + RMS_EPS)


def _block_ref(x, p, i):
    h = _rmsnorm_ref(x, p["norm1_w"][i])
    zxbcdt = h @ p["in_proj_w"][i].T
    z = zxbcdt[:, :D_INNER]
    xBC = zxbcdt[:, D_INNER:D_INNER + CONV_DIM]
    dt = zxbcdt[:, D_INNER + CONV_DIM:]
    xBC = jax.nn.silu(xBC * p["conv_w"][i][:, -1][None, :] + p["conv_b"][i][None, :])
    xs = xBC[:, :D_INNER]
    Bm = xBC[:, D_INNER:D_INNER + NGROUPS * D_STATE]
    Cm = xBC[:, D_INNER + NGROUPS * D_STATE:]
    dt = jax.nn.softplus(dt + p["dt_bias"][i][None, :])
    cb = jnp.sum(Bm * Cm, axis=-1, keepdims=True)
    scale = dt * cb + p["D"][i][None, :]
    y = jnp.repeat(scale, HEADDIM, axis=-1) * xs
    y = y * jax.nn.silu(z)
    y = p["gated_w"][i] * y * lax.rsqrt(jnp.mean(y * y, axis=-1, keepdims=True) + GATED_EPS)
    x = x + y @ p["out_proj_w"][i].T
    h2 = _rmsnorm_ref(x, p["norm2_w"][i])
    ff = jax.nn.gelu(h2 @ p["mlp_w1"][i].T + p["mlp_b1"][i], approximate=False)
    x = x + ff @ p["mlp_w2"][i].T + p["mlp_b2"][i]
    return x


def submodel2_ref(embeddings, attention_mask, p):
    masked = attention_mask[:, :, None] * embeddings
    mask_len = jnp.sum(attention_mask, axis=1, keepdims=True)
    x = jnp.sum(masked, axis=1) / (mask_len + 1e-8)
    for i in range(NUM_BLOCKS):
        x = _block_ref(x, p, i)
    return x


# ----------------------------- parameter init --------------------------------
def init_params(key):
    nb = NUM_BLOCKS
    ks = jax.random.split(key, 5)
    nrm = lambda k, shape, s: (s * jax.random.normal(k, shape)).astype(jnp.float32)
    return dict(
        norm1_w=jnp.ones((nb, D_MODEL), jnp.float32),
        in_proj_w=nrm(ks[0], (nb, D_IN_PROJ, D_MODEL), 0.05),
        conv_w=nrm(ks[1], (nb, CONV_DIM, D_CONV), 0.2),
        conv_b=jnp.zeros((nb, CONV_DIM), jnp.float32),
        dt_bias=jnp.log(jnp.expm1(jnp.linspace(0.01, 0.1, nb * NHEADS)))
                  .reshape(nb, NHEADS).astype(jnp.float32),
        A_log=jnp.log(jnp.linspace(1.0, 16.0, nb * NHEADS))
                 .reshape(nb, NHEADS).astype(jnp.float32),     # kept in params; unused at L == 1
        D=jnp.ones((nb, NHEADS), jnp.float32),
        gated_w=jnp.ones((nb, D_INNER), jnp.float32),
        out_proj_w=nrm(ks[2], (nb, D_MODEL, D_INNER), 0.05),
        norm2_w=jnp.ones((nb, D_MODEL), jnp.float32),
        mlp_w1=nrm(ks[3], (nb, D_FF, D_MODEL), 0.05),
        mlp_b1=jnp.zeros((nb, D_FF), jnp.float32),
        mlp_w2=nrm(ks[4], (nb, D_MODEL, D_FF), 0.05),
        mlp_b2=jnp.zeros((nb, D_MODEL), jnp.float32),
    )


# ----------------------------- main -------------------------------------------
if __name__ == "__main__":
    key = jax.random.PRNGKey(0)
    k_emb, k_p = jax.random.split(key, 2)

    embeddings = jax.random.normal(k_emb, (BATCH, SEQ, D_MODEL), jnp.float32)
    lengths = jnp.array([[6], [8]], jnp.int32)
    attention_mask = (jnp.arange(SEQ)[None, :] < lengths).astype(jnp.float32)   # (B, S)

    params = init_params(k_p)

    out = submodel2_pallas(embeddings, attention_mask, params)
    out = jax.block_until_ready(out)

    ref = submodel2_ref(embeddings, attention_mask, params)
    max_err = float(jnp.max(jnp.abs(out - ref)))
    assert out.shape == (BATCH, D_MODEL)
    assert max_err < 1e-3, f"mismatch vs reference, max abs err = {max_err}"
    print("KERNEL_OK")
</pallas_src>

<mosaic_0001>
module attributes {stable_mosaic.version = 11 : i64} {
  func.func @submodel2_kernel(%arg0: memref<2x8x32xf32, #tpu.memory_space<vmem>>, %arg1: memref<2x8xf32, #tpu.memory_space<vmem>>, %arg2: memref<6x32x384xf32, #tpu.memory_space<vmem>>, %arg3: memref<6x192x32xf32, #tpu.memory_space<vmem>>, %arg4: memref<6x4x128xf32, #tpu.memory_space<vmem>>, %arg5: memref<2x32xf32, #tpu.memory_space<vmem>>) attributes {dimension_semantics = [], scalar_prefetch = 0 : i64, scratch_operands = 0 : i64, tpu.core_type = #tpu.core_type<tc>} {
    %c0 = arith.constant 0 : index
    %c0_0 = arith.constant 0 : index
    %c0_1 = arith.constant 0 : index
    %0 = vector.load %arg0[%c0, %c0_0, %c0_1] : memref<2x8x32xf32, #tpu.memory_space<vmem>>, vector<2x8x32xf32>
    %c0_2 = arith.constant 0 : index
    %c0_3 = arith.constant 0 : index
    %1 = vector.load %arg1[%c0_2, %c0_3] : memref<2x8xf32, #tpu.memory_space<vmem>>, vector<2x8xf32>
    %2 = vector.shape_cast %1 : vector<2x8xf32> to vector<2x8x1xf32>
    %3 = vector.broadcast %2 : vector<2x8x1xf32> to vector<2x8x32xf32>
    %4 = arith.mulf %3, %0 : vector<2x8x32xf32>
    %cst = arith.constant dense<0.000000e+00> : vector<2xf32>
    %5 = vector.multi_reduction <add>, %1, %cst [1] : vector<2x8xf32> to vector<2xf32>
    %6 = vector.shape_cast %5 : vector<2xf32> to vector<2x1xf32>
    %cst_4 = arith.constant dense<0.000000e+00> : vector<2x32xf32>
    %7 = vector.multi_reduction <add>, %4, %cst_4 [1] : vector<2x8x32xf32> to vector<2x32xf32>
    %cst_5 = arith.constant 9.99999993E-9 : f32
    %8 = vector.broadcast %cst_5 : f32 to vector<2x1xf32>
    %9 = arith.addf %6, %8 : vector<2x1xf32>
    %10 = vector.broadcast %9 : vector<2x1xf32> to vector<2x32xf32>
    %11 = arith.divf %7, %10 : vector<2x32xf32>
    %c0_i32 = arith.constant 0 : i32
    %c6_i32 = arith.constant 6 : i32
    %12 = arith.addi %c0_i32, %c6_i32 : i32
    %c1_i32 = arith.constant 1 : i32
    %13 = scf.for %arg6 = %c0_i32 to %12 step %c1_i32 iter_args(%arg7 = %11) -> (vector<2x32xf32>)  : i32 {
      %15 = arith.index_cast %arg6 : i32 to index
      %c0_9 = arith.constant 0 : index
      %c0_10 = arith.constant 0 : index
      %16 = vector.load %arg2[%15, %c0_9, %c0_10] : memref<6x32x384xf32, #tpu.memory_space<vmem>>, vector<1x32x384xf32>
      %17 = vector.shape_cast %16 : vector<1x32x384xf32> to vector<32x384xf32>
      %18 = arith.index_cast %arg6 : i32 to index
      %c0_11 = arith.constant 0 : index
      %c0_12 = arith.constant 0 : index
      %19 = vector.load %arg3[%18, %c0_11, %c0_12] : memref<6x192x32xf32, #tpu.memory_space<vmem>>, vector<1x192x32xf32>
      %20 = vector.shape_cast %19 : vector<1x192x32xf32> to vector<192x32xf32>
      %21 = arith.index_cast %arg6 : i32 to index
      %c0_13 = arith.constant 0 : index
      %c0_14 = arith.constant 0 : index
      %22 = vector.load %arg4[%21, %c0_13, %c0_14] : memref<6x4x128xf32, #tpu.memory_space<vmem>>, vector<1x4x128xf32>
      %23 = vector.shape_cast %22 : vector<1x4x128xf32> to vector<4x128xf32>
      %24 = vector.extract_strided_slice %23 {offsets = [0, 0], sizes = [1, 32], strides = [1, 1]} : vector<4x128xf32> to vector<1x32xf32>
      %25 = vector.extract_strided_slice %23 {offsets = [0, 32], sizes = [1, 32], strides = [1, 1]} : vector<4x128xf32> to vector<1x32xf32>
      %26 = vector.extract_strided_slice %23 {offsets = [0, 64], sizes = [1, 64], strides = [1, 1]} : vector<4x128xf32> to vector<1x64xf32>
      %27 = vector.extract_strided_slice %23 {offsets = [1, 0], sizes = [1, 128], strides = [1, 1]} : vector<4x128xf32> to vector<1x128xf32>
      %28 = vector.extract_strided_slice %23 {offsets = [2, 0], sizes = [1, 128], strides = [1, 1]} : vector<4x128xf32> to vector<1x128xf32>
      %29 = vector.extract_strided_slice %23 {offsets = [3, 0], sizes = [1, 128], strides = [1, 1]} : vector<4x128xf32> to vector<1x128xf32>
      %30 = arith.mulf %arg7, %arg7 : vector<2x32xf32>
      %cst_15 = arith.constant dense<0.000000e+00> : vector<2xf32>
      %31 = vector.multi_reduction <add>, %30, %cst_15 [1] : vector<2x32xf32> to vector<2xf32>
      %32 = vector.shape_cast %31 : vector<2xf32> to vector<2x1xf32>
      %cst_16 = arith.constant 9.99999997E-7 : f32
      %33 = vector.broadcast %cst_16 : f32 to vector<2x1xf32>
      %34 = arith.addf %32, %33 : vector<2x1xf32>
      %35 = math.rsqrt %34 : vector<2x1xf32>
      %36 = vector.broadcast %24 : vector<1x32xf32> to vector<2x32xf32>
      %37 = arith.mulf %36, %arg7 : vector<2x32xf32>
      %38 = vector.broadcast %35 : vector<2x1xf32> to vector<2x32xf32>
      %39 = arith.mulf %37, %38 : vector<2x32xf32>
      %40 = vector.extract_strided_slice %17 {offsets = [0, 0], sizes = [32, 256], strides = [1, 1]} : vector<32x384xf32> to vector<32x256xf32>
      %cst_17 = arith.constant dense<0.000000e+00> : vector<2x256xf32>
      %41 = tpu.matmul %39, %40, %cst_17 {dimension_numbers = #tpu.dot_dimension_numbers<[1], [0], [0], [1], [0, 0, 1, 1], [], []>} : vector<2x32xf32>, vector<32x256xf32>, vector<2x256xf32> -> vector<2x256xf32>
      %42 = vector.extract_strided_slice %41 {offsets = [0, 0], sizes = [2, 128], strides = [1, 1]} : vector<2x256xf32> to vector<2x128xf32>
      %43 = vector.broadcast %28 : vector<1x128xf32> to vector<2x128xf32>
      %44 = arith.addf %42, %43 : vector<2x128xf32>
      %cst_18 = arith.constant 0.000000e+00 : f32
      %45 = vector.broadcast %cst_18 : f32 to vector<2x128xf32>
      %46 = arith.subf %45, %44 : vector<2x128xf32>
      %47 = math.exp %46 : vector<2x128xf32>
      %cst_19 = arith.constant 1.000000e+00 : f32
      %48 = vector.broadcast %cst_19 : f32 to vector<2x128xf32>
      %49 = arith.addf %48, %47 : vector<2x128xf32>
      %50 = tpu.reciprocal %49 {approx = true} : vector<2x128xf32> -> vector<2x128xf32>
      %51 = arith.mulf %44, %50 : vector<2x128xf32>
      %52 = vector.extract_strided_slice %41 {offsets = [0, 128], sizes = [2, 128], strides = [1, 1]} : vector<2x256xf32> to vector<2x128xf32>
      %53 = vector.broadcast %29 : vector<1x128xf32> to vector<2x128xf32>
      %54 = arith.addf %52, %53 : vector<2x128xf32>
      %55 = vector.extract_strided_slice %51 {offsets = [0, 0], sizes = [2, 64], strides = [1, 1]} : vector<2x128xf32> to vector<2x64xf32>
      %56 = vector.extract_strided_slice %51 {offsets = [0, 64], sizes = [2, 64], strides = [1, 1]} : vector<2x128xf32> to vector<2x64xf32>
      %57 = vector.extract_strided_slice %54 {offsets = [0, 0], sizes = [2, 32], strides = [1, 1]} : vector<2x128xf32> to vector<2x32xf32>
      %cst_20 = arith.constant 0.000000e+00 : f32
      %58 = vector.broadcast %cst_20 : f32 to vector<2x32xf32>
      %59 = arith.subf %58, %57 : vector<2x32xf32>
      %60 = math.exp %59 : vector<2x32xf32>
      %cst_21 = arith.constant 1.000000e+00 : f32
      %61 = vector.broadcast %cst_21 : f32 to vector<2x32xf32>
      %62 = arith.addf %61, %60 : vector<2x32xf32>
      %63 = tpu.reciprocal %62 {approx = true} : vector<2x32xf32> -> vector<2x32xf32>
      %64 = arith.mulf %57, %63 : vector<2x32xf32>
      %65 = vector.extract_strided_slice %64 {offsets = [0, 0], sizes = [2, 16], strides = [1, 1]} : vector<2x32xf32> to vector<2x16xf32>
      %66 = vector.extract_strided_slice %64 {offsets = [0, 16], sizes = [2, 16], strides = [1, 1]} : vector<2x32xf32> to vector<2x16xf32>
      %67 = vector.extract_strided_slice %54 {offsets = [0, 32], sizes = [2, 1], strides = [1, 1]} : vector<2x128xf32> to vector<2x1xf32>
      %cst_22 = arith.constant 0.000000e+00 : f32
      %68 = vector.broadcast %cst_22 : f32 to vector<2x1xf32>
      %69 = arith.maximumf %67, %68 : vector<2x1xf32>
      %70 = math.absf %67 : vector<2x1xf32>
      %cst_23 = arith.constant 0.000000e+00 : f32
      %71 = vector.broadcast %cst_23 : f32 to vector<2x1xf32>
      %72 = arith.subf %71, %70 : vector<2x1xf32>
      %73 = math.exp %72 : vector<2x1xf32>
      %cst_24 = arith.constant 1.000000e+00 : f32
      %74 = vector.broadcast %cst_24 : f32 to vector<2x1xf32>
      %75 = arith.addf %74, %73 : vector<2x1xf32>
      %76 = math.log %75 : vector<2x1xf32>
      %77 = arith.addf %69, %76 : vector<2x1xf32>
      %78 = vector.extract_strided_slice %54 {offsets = [0, 33], sizes = [2, 1], strides = [1, 1]} : vector<2x128xf32> to vector<2x1xf32>
      %79 = arith.mulf %65, %66 : vector<2x16xf32>
      %cst_25 = arith.constant dense<0.000000e+00> : vector<2xf32>
      %80 = vector.multi_reduction <add>, %79, %cst_25 [1] : vector<2x16xf32> to vector<2xf32>
      %81 = vector.shape_cast %80 : vector<2xf32> to vector<2x1xf32>
      %82 = arith.mulf %77, %81 : vector<2x1xf32>
      %83 = arith.addf %82, %78 : vector<2x1xf32>
      %84 = vector.broadcast %83 : vector<2x1xf32> to vector<2x64xf32>
      %85 = arith.mulf %84, %55 : vector<2x64xf32>
      %86 = arith.mulf %85, %56 : vector<2x64xf32>
      %87 = vector.broadcast %26 : vector<1x64xf32> to vector<2x64xf32>
      %88 = arith.mulf %87, %86 : vector<2x64xf32>
      %89 = arith.mulf %86, %86 : vector<2x64xf32>
      %cst_26 = arith.constant dense<0.000000e+00> : vector<2xf32>
      %90 = vector.multi_reduction <add>, %89, %cst_26 [1] : vector<2x64xf32> to vector<2xf32>
      %91 = vector.shape_cast %90 : vector<2xf32> to vector<2x1xf32>
      %cst_27 = arith.constant 6.400000e+01 : f32
      %92 = vector.broadcast %cst_27 : f32 to vector<2x1xf32>
      %93 = arith.divf %91, %92 : vector<2x1xf32>
      %cst_28 = arith.constant 9.99999974E-6 : f32
      %94 = vector.broadcast %cst_28 : f32 to vector<2x1xf32>
      %95 = arith.addf %93, %94 : vector<2x1xf32>
      %96 = math.rsqrt %95 : vector<2x1xf32>
      %97 = vector.broadcast %96 : vector<2x1xf32> to vector<2x64xf32>
      %98 = arith.mulf %88, %97 : vector<2x64xf32>
      %99 = vector.extract_strided_slice %20 {offsets = [0, 0], sizes = [64, 32], strides = [1, 1]} : vector<192x32xf32> to vector<64x32xf32>
      %cst_29 = arith.constant dense<0.000000e+00> : vector<2x32xf32>
      %100 = tpu.matmul %98, %99, %cst_29 {dimension_numbers = #tpu.dot_dimension_numbers<[1], [0], [0], [1], [0, 0, 1, 1], [], []>} : vector<2x64xf32>, vector<64x32xf32>, vector<2x32xf32> -> vector<2x32xf32>
      %101 = arith.addf %arg7, %100 : vector<2x32xf32>
      %102 = arith.mulf %101, %101 : vector<2x32xf32>
      %cst_30 = arith.constant dense<0.000000e+00> : vector<2xf32>
      %103 = vector.multi_reduction <add>, %102, %cst_30 [1] : vector<2x32xf32> to vector<2xf32>
      %104 = vector.shape_cast %103 : vector<2xf32> to vector<2x1xf32>
      %cst_31 = arith.constant 9.99999997E-7 : f32
      %105 = vector.broadcast %cst_31 : f32 to vector<2x1xf32>
      %106 = arith.addf %104, %105 : vector<2x1xf32>
      %107 = math.rsqrt %106 : vector<2x1xf32>
      %108 = vector.broadcast %25 : vector<1x32xf32> to vector<2x32xf32>
      %109 = arith.mulf %108, %101 : vector<2x32xf32>
      %110 = vector.broadcast %107 : vector<2x1xf32> to vector<2x32xf32>
      %111 = arith.mulf %109, %110 : vector<2x32xf32>
      %112 = vector.extract_strided_slice %17 {offsets = [0, 256], sizes = [32, 128], strides = [1, 1]} : vector<32x384xf32> to vector<32x128xf32>
      %cst_32 = arith.constant dense<0.000000e+00> : vector<2x128xf32>
      %113 = tpu.matmul %111, %112, %cst_32 {dimension_numbers = #tpu.dot_dimension_numbers<[1], [0], [0], [1], [0, 0, 1, 1], [], []>} : vector<2x32xf32>, vector<32x128xf32>, vector<2x128xf32> -> vector<2x128xf32>
      %114 = vector.broadcast %27 : vector<1x128xf32> to vector<2x128xf32>
      %115 = arith.addf %113, %114 : vector<2x128xf32>
      %cst_33 = arith.constant 5.000000e-01 : f32
      %116 = vector.broadcast %cst_33 : f32 to vector<2x128xf32>
      %117 = arith.mulf %116, %115 : vector<2x128xf32>
      %cst_34 = arith.constant 0.707106769 : f32
      %118 = vector.broadcast %cst_34 : f32 to vector<2x128xf32>
      %119 = arith.mulf %115, %118 : vector<2x128xf32>
      %cst_35 = arith.constant 0.000000e+00 : f32
      %120 = vector.broadcast %cst_35 : f32 to vector<2x128xf32>
      %121 = arith.cmpf oge, %119, %120 : vector<2x128xf32>
      %cst_36 = arith.constant 1.000000e+00 : f32
      %cst_37 = arith.constant -1.000000e+00 : f32
      %122 = vector.broadcast %cst_36 : f32 to vector<2x128xf32>
      %123 = vector.broadcast %cst_37 : f32 to vector<2x128xf32>
      %124 = arith.select %121, %122, %123 : vector<2x128xi1>, vector<2x128xf32>
      %125 = math.absf %119 : vector<2x128xf32>
      %cst_38 = arith.constant 0.327591091 : f32
      %126 = vector.broadcast %cst_38 : f32 to vector<2x128xf32>
      %127 = arith.mulf %126, %125 : vector<2x128xf32>
      %cst_39 = arith.constant 1.000000e+00 : f32
      %128 = vector.broadcast %cst_39 : f32 to vector<2x128xf32>
      %129 = arith.addf %128, %127 : vector<2x128xf32>
      %130 = tpu.reciprocal %129 {approx = true} : vector<2x128xf32> -> vector<2x128xf32>
      %cst_40 = arith.constant 1.06140542 : f32
      %131 = vector.broadcast %cst_40 : f32 to vector<2x128xf32>
      %132 = arith.mulf %130, %131 : vector<2x128xf32>
      %cst_41 = arith.constant -1.45315206 : f32
      %133 = vector.broadcast %cst_41 : f32 to vector<2x128xf32>
      %134 = arith.addf %133, %132 : vector<2x128xf32>
      %135 = arith.mulf %130, %134 : vector<2x128xf32>
      %cst_42 = arith.constant 1.42141378 : f32
      %136 = vector.broadcast %cst_42 : f32 to vector<2x128xf32>
      %137 = arith.addf %136, %135 : vector<2x128xf32>
      %138 = arith.mulf %130, %137 : vector<2x128xf32>
      %cst_43 = arith.constant -0.284496725 : f32
      %139 = vector.broadcast %cst_43 : f32 to vector<2x128xf32>
      %140 = arith.addf %139, %138 : vector<2x128xf32>
      %141 = arith.mulf %130, %140 : vector<2x128xf32>
      %cst_44 = arith.constant 0.254829586 : f32
      %142 = vector.broadcast %cst_44 : f32 to vector<2x128xf32>
      %143 = arith.addf %142, %141 : vector<2x128xf32>
      %144 = arith.mulf %130, %143 : vector<2x128xf32>
      %cst_45 = arith.constant 0.000000e+00 : f32
      %145 = vector.broadcast %cst_45 : f32 to vector<2x128xf32>
      %146 = arith.subf %145, %125 : vector<2x128xf32>
      %147 = arith.mulf %146, %125 : vector<2x128xf32>
      %148 = math.exp %147 : vector<2x128xf32>
      %149 = arith.mulf %144, %148 : vector<2x128xf32>
      %cst_46 = arith.constant 1.000000e+00 : f32
      %150 = vector.broadcast %cst_46 : f32 to vector<2x128xf32>
      %151 = arith.subf %150, %149 : vector<2x128xf32>
      %152 = arith.mulf %124, %151 : vector<2x128xf32>
      %cst_47 = arith.constant 1.000000e+00 : f32
      %153 = vector.broadcast %cst_47 : f32 to vector<2x128xf32>
      %154 = arith.addf %153, %152 : vector<2x128xf32>
      %155 = arith.mulf %117, %154 : vector<2x128xf32>
      %156 = vector.extract_strided_slice %29 {offsets = [0, 64], sizes = [1, 32], strides = [1, 1]} : vector<1x128xf32> to vector<1x32xf32>
      %157 = vector.extract_strided_slice %20 {offsets = [64, 0], sizes = [128, 32], strides = [1, 1]} : vector<192x32xf32> to vector<128x32xf32>
      %cst_48 = arith.constant dense<0.000000e+00> : vector<2x32xf32>
      %158 = tpu.matmul %155, %157, %cst_48 {dimension_numbers = #tpu.dot_dimension_numbers<[1], [0], [0], [1], [0, 0, 1, 1], [], []>} : vector<2x128xf32>, vector<128x32xf32>, vector<2x32xf32> -> vector<2x32xf32>
      %159 = arith.addf %101, %158 : vector<2x32xf32>
      %160 = vector.broadcast %156 : vector<1x32xf32> to vector<2x32xf32>
      %161 = arith.addf %159, %160 : vector<2x32xf32>
      scf.yield %161 : vector<2x32xf32>
    }
    %c6_i32_6 = arith.constant 6 : i32
    %c0_7 = arith.constant 0 : index
    %c0_8 = arith.constant 0 : index
    %14 = vector.load %arg5[%c0_7, %c0_8] : memref<2x32xf32, #tpu.memory_space<vmem>>, vector<2x32xf32>
    tpu.vector_store %arg5[%c0_7, %c0_8], %13 {strides = array<i32>} : memref<2x32xf32, #tpu.memory_space<vmem>>, vector<2x32xf32>,
    return
  }
}

</mosaic_0001>

<bundles_post_ra>
// kernel: tpu_custom_call.1
= control target key start
LH: loop header
LB: loop body
LE: loop exit
PB: predicated region body
PF: predicated region fallthrough
CT: control target
= control target key end

     0   :  { %vm40_vm0 = vcmask 58368   ;;  %v24_v1 = vlaneseq  ;;  %s1056_s0 = inlined_call_operand.vmem [shape: f32[2,8,32], index: 0, kind: input, shape index: {}]   ;;  %s1057_s1 = inlined_call_operand.vmem [shape: f32[2,8], index: 1, kind: input, shape index: {}]   ;;  %s1058_s2 = inlined_call_operand.vmem [shape: f32[6,32,384], index: 2, kind: input, shape index: {}]   ;;  %s1059_s3 = inlined_call_operand.vmem [shape: f32[6,192,32], index: 3, kind: input, shape index: {}]   ;;  %s1060_s4 = inlined_call_operand.vmem [shape: f32[6,4,128], index: 4, kind: input, shape index: {}]   ;;  %s1061_s5 = inlined_call_operand.hbm [shape: f32[2,32], index: 5, kind: output, shape index: {}]  }
   0x1   :  { %v23_v0 = vld [vmem:[%s1057_s1] sm:$0x3] }
   0x2   :  { %v41_v2 = vsel %vm40_vm0, %v23_v0, 0.0 }
   0x3   :  { %10 = vsyncpa [#allocation3], 0  ;;  %42 = vadd.xlane.f32.xlu0 %v41_v2  ;;  %v873_v3 = vshrl.u32 %v24_v1, 7  ;;  %v22_v9 = vld [vmem:[%s1056_s0 + $0x8] sm:$0xff]  ;;  %vm44_vm1 = vcmask 261120   ;;  %v21_v16 = vld [vmem:[%s1056_s0] sm:$0xff] }
   0x4   :  { %s893_s0 = smov 0  }
   0x5   :  { %v33_v4 = vsub.s32 1, %v873_v3  ;;  %v26_v6 = vsub.s32 0, %v873_v3 }
   0x7   :  { %v34_v5 = vrot.slane %v23_v0, %v33_v4  ;;  %v27_v7 = vrot.slane %v23_v0, %v26_v6 }
   0x9   :  { %36 = vbcast.lane.b32.xlu1 %v34_v5, 256 }
  0x19   :  { %29 = vbcast.lane.b32.xlu0 %v27_v7, 256 }
  0x7b   :  { %v37_v8 = vpop.permute.xlu1 %36 }
  0x7c   :  { %v39_v10 = vmul.f32 %v37_v8, %v22_v9 }
  0x7e   :  { %v52_v11 = vsel %vm44_vm1, %v39_v10, 0.0 }
  0x7f   :  { %v53_v12 = vrot.slane %v52_v11, 4 }
  0x81   :  { %v54_v14 = vadd.f32 %v53_v12, %v52_v11 }
  0x83   :  { %v55_v19 = vrot.slane %v54_v14, 2 }
  0x85   :  { %v56_v23 = vadd.f32 %v55_v19, %v54_v14 }
  0x87   :  { %v57_v26 = vrot.slane %v56_v23, 1 }
  0x89   :  { %v58_v29 = vadd.f32 %v57_v26, %v56_v23 }
  0x8c   :  { %v43_v13 = vpop.xlane.xlu0 %42 }
  0x8d   :  { %v59_v15 = vadd.f32 1e-08, %v43_v13 }
  0x8f   :  { %v61_v17 = vrot.slane %v59_v15, 1 }
  0x90   :  { %v30_v18 = vpop.permute.xlu0 %29 }
  0x91   :  { %756 = vrcp.f32 %v61_v17  ;;  %v38_v20 = vmul.f32 %v30_v18, %v21_v16 }
  0x92   :  { %758 = vrcp.f32 %v59_v15 }
  0x93   :  { %v45_v21 = vsel %vm44_vm1, %v38_v20, 0.0 }
  0x94   :  { %v46_v22 = vrot.slane %v45_v21, 4 }
  0x96   :  { %v47_v24 = vadd.f32 %v46_v22, %v45_v21 }
  0x98   :  { %v48_v25 = vrot.slane %v47_v24, 2 }
  0x9a   :  { %v49_v27 = vadd.f32 %v48_v25, %v47_v24 }
  0x9c   :  { %v50_v28 = vrot.slane %v49_v27, 1 }
  0x9e   :  { %v757_v30 = vpop.eup %756  ;;  %v51_v31 = vadd.f32 %v50_v28, %v49_v27 }
  0x9f   :  { %v759_v32 = vpop.eup %758  ;;  %v67_v33 = vmul.f32 %v757_v30, %v58_v29  }
  0xa0   :  { %v65_v34 = vmul.f32 %v759_v32, %v51_v31  }
  0xa1 LB: > { %v120_v35 = vmul.f32 %v824_v34, %v824_v34  ;;  %v121_v36 = vmul.f32 %v820_v33, %v820_v33  ;;  %vm125_vm2 = vcmask 1041409   ;;  %vm128_vm3 = vcmask 254976   ;;  %s625_s23 = smul.u32 96, %s828_s0  ;;  %s621_s27 = sshll.u32 %s828_s0, 2  ;;  %s828_s0 = sphi %s893_s0, %s73_s0   ;;  %v824_v34 = vphi %v65_v34, %v1063_v34   ;;  %v820_v33 = vphi %v67_v33, %v1062_v33  }
  0xa2   : > { %v830_v40 = vmov 0.0   ;;  %s118_s30 = scalar_lea.vmem %s1060_s4, %s621_s27  ;;  %v140_v51 = vrot.slane %v820_v33, 7  ;;  %v232_v58 = vsub.s32 3, %v873_v3  ;;  %s831_s6 = smov 112   ;;  %vm255_vm4 = vcmask 123904  }
  0xa3   : > { %v124_v37 = vrot.slane %v121_v36, 7  ;;  %212 = vmatprep.mubr.f32.mxu1 %v830_v40  ;;  %687 = vmatprep.subr.mxu0 %v830_v40  ;;  %s916_s26 = scalar_lea.vmem %s1058_s2, %s625_s23  ;;  %v932_v52 = vld [vmem:[%s118_s30] sm:$0xf]  ;;  %v832_v11 = vmov 32   ;;  %s833_s7 = smov 127   ;;  %v221_v13 = vsub.s32 2, %v873_v3 }
  0xa4   : > { %v89_v41 = vld [vmem:[%s916_s26 + $0x50] sm:$0xff]  ;;  %v88_v42 = vld [vmem:[%s916_s26 + $0x48] sm:$0xff]  ;;  %v86_v43 = vld [vmem:[%s916_s26 + $0x38] sm:$0xff]  ;;  %v937_v53 = vrot.slane %v932_v52, %v26_v6  ;;  %v141_v54 = vsel %vm125_vm2, %v140_v51, %v824_v34  ;;  %v945_v59 = vrot.slane %v932_v52, %v232_v58  ;;  %760 = vset.pattern.permute.xlu1 %v832_v11  ;;  %761 = vset.pattern.permute.xlu0 %v832_v11  ;;  %s834_s8 = smov 64   ;;  %vm282_vm5 = vcmask 517120   ;;  %s91_s9 = smul.u32 192, %s828_s0 }
  0xa5   : > { %v126_v38 = vsel %vm125_vm2, %v124_v37, %v120_v35  ;;  %172 = vmatprep.subr.mxu1 %v89_v41  ;;  %v85_v44 = vld [vmem:[%s916_s26 + $0x30] sm:$0xff]  ;;  %v83_v45 = vld [vmem:[%s916_s26 + $0x20] sm:$0xff]  ;;  %v82_v46 = vld [vmem:[%s916_s26 + $0x18] sm:$0xff]  ;;  %v222_v15 = vrot.slane %v932_v52, %v221_v13  ;;  %vm835_vm6 = vmmov 0   ;;  %vm294_vm7 = vcmask 523264   ;;  %s836_s13 = smov 32  }
  0xa6   : > { %v129_v39 = vsel %vm128_vm3, %v126_v38, 0.0  ;;  %173 = vmatpush1.msra.mxu1 %v88_v42  ;;  %v80_v47 = vld [vmem:[%s916_s26 + $0x8] sm:$0xff]  ;;  %v79_v48 = vld [vmem:[%s916_s26] sm:$0xff]  ;;  %v143_v55 = vmul.f32 %v141_v54, %v937_v53  ;;  %s956_s12 = scalar_lea.vmem %s1059_s3, %s91_s9  ;;  %719 = vmatprep.mubr.msk.f32.mxu0 %vm835_vm6, %v830_v40  ;;  %v90_v11 = vld [vmem:[%s916_s26 + $0x58] sm:$0xff]  ;;  %s837_s14 = smov 96  }
  0xa7   : > { %130 = vadd.xlane.f32.xlu0 %v129_v39  ;;  %174 = vmatprep.subr.mxu1 %v86_v43  ;;  %v100_v43 = vld [vmem:[%s956_s12 + $0x38] sm:$0xff]  ;;  %v84_v13 = vld [vmem:[%s916_s26 + $0x28] sm:$0xff]  ;;  %s73_s0 = sadd.s32 1, %s828_s0  }
  0xa8   : > { %175 = vmatpush1.msra.mxu1 %v85_v44  ;;  %v99_v44 = vld [vmem:[%s956_s12 + $0x30] sm:$0xff]  ;;  %p70_p0 = scmp.ge.s32.totalorder %s73_s0, 6  }
  0xa9   : > { %176 = vmatprep.subr.mxu1 %v83_v45  ;;  %v98_v45 = vld [vmem:[%s956_s12 + $0x28] sm:$0xff]  ;;  %s839_s15 = smov (%p70_p0), [#allocation2]  }
  0xaa   : > { %177 = vmatpush1.msra.mxu1 %v82_v46  ;;  %v97_v46 = vld [vmem:[%s956_s12 + $0x20] sm:$0xff]  ;;  %s595_s16 = sshll.u32 (%p70_p0), %s839_s15, 4  ;;  %s596_s16 = int_to_ptr.vmem [resolvable:$true] %s595_s16 }
  0xab   : > { %178 = vmatprep.subr.mxu1 %v80_v47  ;;  %v96_v47 = vld [vmem:[%s956_s12 + $0x18] sm:$0xff]  ;;  %s784_s17 = scalar_lea.vmem (%p70_p0), %s596_s16, 32  ;;  %p789_p2 = scmp.lt.s32.totalorder (%p70_p0), %s596_s16, %s596_s16 }
  0xac   : > { %179 = vmatpush1.msra.mxu1 %v79_v48  ;;  %v95_v48 = vld [vmem:[%s956_s12 + $0x10] sm:$0xff]  ;;  %p785_p1 = scmp.ne.s32.totalorder (%p70_p0), %s596_s16, %s784_s17  ;;  %p790_p3 = scmp.lt.s32.totalorder (%p70_p0), %s784_s17, %s784_s17 }
  0xad   : > { %657 = vmatprep.subr.mxu1 %v830_v40 }
  0xae   :  { %p791_p4 = por (%p70_p0), %p790_p3, %p789_p2 }
  0xb0   :  { %p792_p5 = pnand (%p70_p0), %p791_p4, %p785_p1 }
 0x130   : > { %v131_v49 = vpop.xlane.xlu0 %130 }
 0x131   : > { %v132_v50 = vadd.f32 1e-06, %v131_v49  ;;  %v94_v49 = vld [vmem:[%s956_s12 + $0x8] sm:$0xff] }
 0x133   : > { %762 = vrsqrt.f32 %v132_v50  ;;  %v93_v50 = vld [vmem:[%s956_s12] sm:$0xff] }
 0x140   : > { %v763_v56 = vpop.eup %762 }
 0x141   : > { %v144_v57 = vmul.f32 %v763_v56, %v143_v55 }
 0x143   : > { %622 = vmatmul.mubr.msk.f32.vlgmr.msra.gmra.mxu1 %vm44_vm1, %v144_v57 }
 0x144   : > { %658 = vmatpush3.msra.mxu1 %v100_v43  ;;  %673 = vmatprep.mubr.msk.f32.mxu1 %vm835_vm6, %v830_v40 }
 0x145   : > { %659 = vmatprep.subr.mxu1 %v830_v40 }
 0x146   : > { %660 = vmatpush3.msra.mxu1 %v99_v44 }
 0x147   : > { %661 = vmatprep.subr.mxu1 %v830_v40 }
 0x148   : > { %662 = vmatpush3.msra.mxu1 %v98_v45 }
 0x149   : > { %663 = vmatprep.subr.mxu1 %v830_v40 }
 0x14a   : > { %664 = vmatpush3.msra.mxu1 %v97_v46 }
 0x14b   : > { %665 = vmatprep.subr.mxu1 %v830_v40 }
 0x14c   : > { %666 = vmatpush3.msra.mxu1 %v96_v47 }
 0x14d   : > { %667 = vmatprep.subr.mxu1 %v830_v40 }
 0x14e   : > { %668 = vmatpush3.msra.mxu1 %v95_v48 }
 0x14f   : > { %669 = vmatprep.subr.mxu1 %v830_v40 }
 0x150   : > { %670 = vmatpush3.msra.mxu1 %v94_v49 }
 0x151   : > { %671 = vmatprep.subr.mxu1 %v830_v40 }
 0x152   : > { %672 = vmatpush3.msra.mxu1 %v93_v50 }
 0x153   : > { %676 = vmatprep.subr.mxu1 %v830_v40 }
 0x203   : > { %v214_v60 = vpop.f32.mrf.mxu1 }
 0x204   : > { %v223_v17 = vadd.f32 %v222_v15, %v214_v60 }
 0x205   : > { %v216_v61 = vpop.f32.mrf.mxu1 }
 0x206   : > { %v234_v62 = vadd.f32 %v945_v59, %v216_v61  ;;  %v224_v18 = vsub.f32 0.0, %v223_v17 }
 0x208   : > { %v235_v63 = vsub.f32 0.0, %v234_v62  ;;  %v242_v12 = vand.u32 2147483647, %v234_v62  ;;  %v225_v19 = vmul.f32 1.442695, %v224_v18  ;;  %v241_v26 = vmax.f32 %v234_v62, 0.0 }
 0x20a   : > { %v236_v0 = vmul.f32 1.442695, %v235_v63  ;;  %v243_v14 = vsub.f32 0.0, %v242_v12  ;;  %v87_v12 = vld [vmem:[%s916_s26 + $0x40] sm:$0xff] }
 0x20c   : > { %764 = vpow2.f32 %v236_v0  ;;  %v244_v16 = vmul.f32 1.442695, %v243_v14  ;;  %v81_v14 = vld [vmem:[%s916_s26 + $0x10] sm:$0xff] }
 0x219   : > { %v765_v1 = vpop.eup %764 }
 0x21a   : > { %v238_v2 = vadd.f32 1.0, %v765_v1 }
 0x21c   : > { %766 = vrcp.f32 %v238_v2 }
 0x21d   : > { %768 = vpow2.f32 %v244_v16 }
 0x21e   : > { %770 = vpow2.f32 %v225_v19 }
 0x229   : > { %v767_v5 = vpop.eup %766 }
 0x22a   : > { %v240_v7 = vmul.f32 %v767_v5, %v234_v62  ;;  %v769_v20 = vpop.eup %768 }
 0x22b   : > { %v246_v21 = vadd.f32 1.0, %v769_v20  ;;  %v771_v22 = vpop.eup %770 }
 0x22c   : > { %251 = vrot.lane.b32.xlu0 %v240_v7, %s831_s6  ;;  %v227_v23 = vadd.f32 1.0, %v771_v22  ;;  %v115_v22 = vld [vmem:[%s956_s12 + $0xb0] sm:$0xff] }
 0x22d   : > { %772 = vlog2.f32 %v246_v21  ;;  %v116_v21 = vld [vmem:[%s956_s12 + $0xb8] sm:$0xff] }
 0x22e   : > { %774 = vrcp.f32 %v227_v23  ;;  %688 = vmatpush3.msra.mxu0 %v116_v21  ;;  %v114_v23 = vld [vmem:[%s956_s12 + $0xa8] sm:$0xff] }
 0x22f   : > { %689 = vmatprep.subr.mxu0 %v830_v40 }
 0x230   : > { %690 = vmatpush3.msra.mxu0 %v115_v22 }
 0x231   : > { %691 = vmatprep.subr.mxu0 %v830_v40 }
 0x232   : > { %692 = vmatpush3.msra.mxu0 %v114_v23 }
 0x233   : > { %693 = vmatprep.subr.mxu0 %v830_v40 }
 0x23a   : > { %v773_v24 = vpop.eup %772 }
 0x23b   : > { %v248_v25 = vmul.f32 0.6931472, %v773_v24  ;;  %v775_v32 = vpop.eup %774  ;;  %v112_v24 = vld [vmem:[%s956_s12 + $0x98] sm:$0xff] }
 0x23c   : > { %v229_v35 = vmul.f32 %v775_v32, %v223_v17  ;;  %v104_v32 = vld [vmem:[%s956_s12 + $0x58] sm:$0xff] }
 0x23d   : > { %v249_v28 = vadd.f32 %v248_v25, %v241_v26  ;;  %v111_v25 = vld [vmem:[%s956_s12 + $0x90] sm:$0xff]  ;;  %v110_v26 = vld [vmem:[%s956_s12 + $0x88] sm:$0xff] }
 0x29e   : > { %v252_v8 = vpop.permute.xlu0 %251 }
 0x29f   : > { %v254_v9 = vmul.f32 %v252_v8, %v240_v7 }
 0x2a1   : > { %v256_v10 = vsel %vm255_vm4, %v254_v9, 0.0 }
 0x2a2   : > { %257 = vadd.xlane.f32.xlu1 %v256_v10 }
 0x2b3   : > { %261 = vrot.lane.b32.xlu1 %v234_v62, %s833_s7 }
 0x32b   : > { %v258_v27 = vpop.xlane.xlu1 %257 }
 0x32c   : > { %v259_v29 = vmul.f32 %v258_v27, %v249_v28  ;;  %v109_v27 = vld [vmem:[%s956_s12 + $0x80] sm:$0xff]  ;;  %v108_v28 = vld [vmem:[%s956_s12 + $0x78] sm:$0xff] }
 0x32f   : > { %v262_v30 = vpop.permute.xlu1 %261 }
 0x330   : > { %v264_v31 = vadd.f32 %v262_v30, %v259_v29  ;;  %v107_v29 = vld [vmem:[%s956_s12 + $0x70] sm:$0xff]  ;;  %v106_v30 = vld [vmem:[%s956_s12 + $0x68] sm:$0xff] }
 0x332   : > { %267 = vperm.xlu1 %760, %v264_v31   ;;  %v105_v31 = vld [vmem:[%s956_s12 + $0x60] sm:$0xff] }
 0x336   : > { %272 = vrot.lane.b32.xlu1 %v229_v35, %s834_s8 }
 0x3ad   : > { %v268_v36 = vpop.permute.xlu1 %267 }
 0x3ae   : > { %v270_v37 = vmul.f32 %v268_v36, %v229_v35  ;;  %v103_v35 = vld [vmem:[%s956_s12 + $0x50] sm:$0xff]  ;;  %v102_v36 = vld [vmem:[%s956_s12 + $0x48] sm:$0xff] }
 0x3b1   : > { %v273_v38 = vpop.permute.xlu1 %272 }
 0x3b2   : > { %v275_v39 = vmul.f32 %v273_v38, %v270_v37  ;;  %v101_v37 = vld [vmem:[%s956_s12 + $0x40] sm:$0xff]  ;;  %v397_v38 = vrot.slane %v932_v52, %v33_v4 }
 0x3b4   : > { %277 = vrot.lane.b32.xlu1 %v275_v39, %s834_s8  ;;  %v281_v41 = vmul.f32 %v275_v39, %v275_v39 }
 0x3b6   : > { %v283_v42 = vsel %vm282_vm5, %v281_v41, 0.0 }
 0x3b7   : > { %284 = vadd.xlane.f32.xlu0 %v283_v42 }
 0x426   : > { %v278_v56 = vpop.permute.xlu1 %277 }
 0x427   : > { %v280_v57 = vmul.f32 %v278_v56, %v937_v53 }
 0x440   : > { %v285_v51 = vpop.xlane.xlu0 %284 }
 0x441   : > { %v287_v54 = vmul.f32 0.015625, %v285_v51 }
 0x443   : > { %v288_v55 = vadd.f32 1e-05, %v287_v54 }
 0x445   : > { %776 = vrsqrt.f32 %v288_v55 }
 0x452   : > { %v777_v58 = vpop.eup %776 }
 0x453   : > { %v290_v60 = vmul.f32 %v777_v58, %v280_v57 }
 0x455   : > { %292 = vrot.lane.b32.xlu1 %v290_v60, %s834_s8 }
 0x4c7   : > { %v293_v61 = vpop.permute.xlu1 %292 }
 0x4c8   : > { %674 = vmatmul.mubr.msk.f32.vlgmr.msra.gmra.mxu1 %vm294_vm7, %v293_v61 }
 0x4c9   : > { %684 = vmatprep.mubr.msk.f32.mxu1 %vm835_vm6, %v830_v40  ;;  %677 = vmatpush3.msra.mxu1 %v90_v11 }
 0x4ca   : > { %678 = vmatprep.subr.mxu1 %v830_v40 }
 0x4cb   : > { %679 = vmatpush3.msra.mxu1 %v87_v12 }
 0x4cc   : > { %680 = vmatprep.subr.mxu1 %v830_v40 }
 0x4cd   : > { %681 = vmatpush3.msra.mxu1 %v84_v13 }
 0x4ce   : > { %682 = vmatprep.subr.mxu1 %v830_v40 }
 0x4cf   : > { %683 = vmatpush3.msra.mxu1 %v81_v14 }
 0x588   : > { %v363_v62 = vpop.f32.mrf.mxu1 }
 0x589   : > { %v368_v63 = vrot.slane %v363_v62, 1  ;;  %v983_v1 = vadd.f32 %v824_v34, %v363_v62 }
 0x58a   : > { %v675_v0 = vpop.f32.mrf.mxu1 }
 0x58b   : > { %v986_v2 = vadd.f32 %v820_v33, %v368_v63  ;;  %v373_v9 = vmul.f32 %v983_v1, %v983_v1  ;;  %v838_v0 = vmov -1.0  }
 0x58d   : > { %v387_v5 = vrot.slane %v986_v2, 7  ;;  %v374_v7 = vmul.f32 %v986_v2, %v986_v2 }
 0x58f   : > { %v388_v8 = vsel %vm125_vm2, %v387_v5, %v983_v1  ;;  %v377_v10 = vrot.slane %v374_v7, 7 }
 0x590   : > { %389 = vrot.lane.b32.xlu0 %v388_v8, %s836_s13 }
 0x591   : > { %v378_v34 = vsel %vm125_vm2, %v377_v10, %v373_v9 }
 0x592   : > { %v380_v33 = vsel %vm128_vm3, %v378_v34, 0.0 }
 0x593   : > { %381 = vadd.xlane.f32.xlu1 %v380_v33 }
 0x594   : > { %576 = vrot.lane.b32.xlu0 %v945_v59, %s834_s8 }
 0x602   : > { %v390_v59 = vpop.permute.xlu0 %389 }
 0x603   : > { %v392_v17 = vmul.f32 %v390_v59, %v937_v53  ;;  %v113_v53 = vld [vmem:[%s956_s12 + $0xa0] sm:$0xff] }
 0x604   : > { %694 = vmatpush3.msra.mxu0 %v113_v53 }
 0x605   : > { %695 = vmatprep.subr.mxu0 %v830_v40 }
 0x606   : > { %696 = vmatpush3.msra.mxu0 %v112_v24  ;;  %v577_v33 = vpop.permute.xlu0 %576 }
 0x607   : > { %697 = vmatprep.subr.mxu0 %v830_v40 }
 0x608   : > { %698 = vmatpush3.msra.mxu0 %v111_v25 }
 0x609   : > { %699 = vmatprep.subr.mxu0 %v830_v40 }
 0x60a   : > { %700 = vmatpush3.msra.mxu0 %v110_v26 }
 0x60b   : > { %701 = vmatprep.subr.mxu0 %v830_v40 }
 0x60c   : > { %702 = vmatpush3.msra.mxu0 %v109_v27 }
 0x60d   : > { %703 = vmatprep.subr.mxu0 %v830_v40 }
 0x60e   : > { %704 = vmatpush3.msra.mxu0 %v108_v28 }
 0x60f   : > { %705 = vmatprep.subr.mxu0 %v830_v40 }
 0x610   : > { %706 = vmatpush3.msra.mxu0 %v107_v29 }
 0x611   : > { %707 = vmatprep.subr.mxu0 %v830_v40 }
 0x612   : > { %708 = vmatpush3.msra.mxu0 %v106_v30 }
 0x613   : > { %709 = vmatprep.subr.mxu0 %v830_v40 }
 0x614   : > { %710 = vmatpush3.msra.mxu0 %v105_v31 }
 0x615   : > { %711 = vmatprep.subr.mxu0 %v830_v40 }
 0x616   : > { %712 = vmatpush3.msra.mxu0 %v104_v32 }
 0x617   : > { %713 = vmatprep.subr.mxu0 %v830_v40 }
 0x618   : > { %714 = vmatpush3.msra.mxu0 %v103_v35 }
 0x619   : > { %715 = vmatprep.subr.mxu0 %v830_v40 }
 0x61a   : > { %716 = vmatpush3.msra.mxu0 %v102_v36 }
 0x61b   : > { %717 = vmatprep.subr.mxu0 %v830_v40 }
 0x61c   : > { %v382_v15 = vpop.xlane.xlu1 %381  ;;  %718 = vmatpush3.msra.mxu0 %v101_v37 }
 0x61d   : > { %v383_v16 = vadd.f32 1e-06, %v382_v15 }
 0x61f   : > { %778 = vrsqrt.f32 %v383_v16 }
 0x62c   : > { %v779_v18 = vpop.eup %778 }
 0x62d   : > { %v393_v19 = vmul.f32 %v779_v18, %v392_v17 }
 0x62f   : > { %399 = vrot.lane.b32.xlu1 %v393_v19, %s837_s14 }
 0x6a1   : > { %v400_v20 = vpop.permute.xlu1 %399 }
 0x6a2   : > { %685 = vmatmul.mubr.msk.f32.vlgmr.msra.gmra.mxu1 %vm44_vm1, %v400_v20 }
 0x762   : > { %v469_v39 = vpop.f32.mrf.mxu1 }
 0x763   : > { %v470_v41 = vadd.f32 %v469_v39, %v397_v38 }
 0x764   : > { %v686_v42 = vpop.f32.mrf.mxu1 }
 0x765   : > { %v474_v43 = vmul.f32 0.70710677, %v470_v41  ;;  %v473_v8 = vmul.f32 0.5, %v470_v41 }
 0x767   : > { %v477_v44 = vand.u32 2147483647, %v474_v43  ;;  %vm475_vm8 = vcmp.ge.f32.partialorder %v474_v43, 0.0 }
 0x768   : > { %v476_v5 = vsel %vm475_vm8, 1.0, %v838_v0 }
 0x769   : > { %v478_v45 = vmul.f32 0.3275911, %v477_v44  ;;  %v490_v47 = vsub.f32 0.0, %v477_v44 }
 0x76b   : > { %v479_v46 = vadd.f32 1.0, %v478_v45  ;;  %v491_v48 = vmul.f32 %v490_v47, %v477_v44 }
 0x76d   : > { %780 = vrcp.f32 %v479_v46  ;;  %v492_v50 = vmul.f32 1.442695, %v491_v48 }
 0x76f   : > { %782 = vpow2.f32 %v492_v50 }
 0x77a   : > { %v781_v49 = vpop.eup %780 }
 0x77b   : > { %v481_v51 = vmul.f32 1.0614054, %v781_v49 }
 0x77c   : > { %v783_v61 = vpop.eup %782 }
 0x77d   : > { %v482_v54 = vadd.f32 -1.4531521, %v481_v51 }
 0x77f   : > { %v483_v40 = vmul.f32 %v781_v49, %v482_v54 }
 0x781   : > { %v484_v55 = vadd.f32 1.4214138, %v483_v40 }
 0x783   : > { %v485_v56 = vmul.f32 %v781_v49, %v484_v55 }
 0x785   : > { %v486_v57 = vadd.f32 -0.28449672, %v485_v56 }
 0x787   : > { %v487_v52 = vmul.f32 %v781_v49, %v486_v57 }
 0x789   : > { %v488_v58 = vadd.f32 0.2548296, %v487_v52 }
 0x78b   : > { %v489_v60 = vmul.f32 %v781_v49, %v488_v58 }
 0x78d   : > { %v494_v62 = vmul.f32 %v783_v61, %v489_v60 }
 0x78f   : > { %v495_v63 = vsub.f32 1.0, %v494_v62 }
 0x791   : > { %v496_v7 = vmul.f32 %v495_v63, %v476_v5 }
 0x793   : > { %v497_v9 = vadd.f32 1.0, %v496_v7 }
 0x795   : > { %v498_v10 = vmul.f32 %v497_v9, %v473_v8 }
 0x797   : > { %720 = vmatmul.mubr.f32.vlgmr.msra.gmra.mxu0 %v498_v10 }
 0x857   : > { %v565_v34 = vpop.f32.mrf.mxu0 }
 0x858   : > { %v570_v11 = vrot.slane %v565_v34, 1  ;;  %v573_v12 = vadd.f32 %v565_v34, %v983_v1 }
 0x859   : > { %v721_v13 = vpop.f32.mrf.mxu0 }
 0x85a   : > { %v574_v14 = vadd.f32 %v570_v11, %v986_v2  ;;  %v579_v15 = vadd.f32 %v577_v33, %v573_v12   ;;  %72 = sbr.rel (!%p70_p0) target bundleno = 161 (0xa1), region = 50 }
 0x85c   : > { %v580_v16 = vadd.f32 %v577_v33, %v574_v14   ;;  %v1063_v34 = vmov %v579_v15 }
 0x85e   : > { %v1062_v33 = vmov %v580_v16  ;;  %v583_v59 = vrot.slane (%p70_p0), %v580_v16, 7 }
 0x860   :  { %v585_v1 = vsel %vm125_vm2, %v583_v59, %v579_v15 }
 0x861   :  { %588 = vst.msk [vmem:[#allocation2] sm:$0x3] %vm128_vm3, %v585_v1 }
 0x862   :  { %795 = shalt.err (!%p792_p5)
}
 0x863   :  { %598 = dma.vmem_to_hbm [thread:$0]  %s596_s16, 32, %s1061_s5, [#allocation3]  }
 0x864   :  { %816 = dma.done.wait [#allocation3], 32  }
 0x865   :  { %817 = vsyncadd [#allocation3], 4294967264 }
 0x866   :  { %602 = vsyncpa [#allocation3], 1 }

</bundles_post_ra>
